<compile_context>
chip_gen: v6e
topology: v6e:2x2x1
jax: 0.10.0
libtpu: 0.0.40
codegen_flags: <defaults>
</compile_context>

<pallas_src>
import functools
import math

import jax
import jax.numpy as jnp
from jax.experimental import pallas as pl
from jax.experimental.pallas import tpu as pltpu

NEG_INF = -1e30  # finite large-negative mask bias (keeps softmax math NaN-free)


def _flash_attention_kernel(*refs, scale, block_kv, has_bias):
    if has_bias:
        q_ref, k_ref, v_ref, bias_ref, o_ref, q_sc, m_sc, l_sc, acc_sc = refs
    else:
        q_ref, k_ref, v_ref, o_ref, q_sc, m_sc, l_sc, acc_sc = refs
        bias_ref = None

    kv = pl.program_id(2)

    @pl.when(kv == 0)
    def _():
        # The q tile is resident across the kv axis: scale it once per q block.
        q_sc[...] = q_ref[0] * jnp.asarray(scale, q_sc.dtype)
        m_sc[...] = jnp.full_like(m_sc, NEG_INF)
        l_sc[...] = jnp.zeros_like(l_sc)
        acc_sc[...] = jnp.zeros_like(acc_sc)

    q = q_sc[...]   # (tq, Dp), pre-scaled, native/compute dtype
    k = k_ref[0]    # (tk, Dp)
    v = v_ref[0]    # (tk, Dp)

    # q @ k^T without an explicit transpose: contract on the feature dim; fp32 acc.
    s = jax.lax.dot_general(q, k, (((1,), (1,)), ((), ())),
                            preferred_element_type=jnp.float32)
    if has_bias:
        # Slice the VMEM-resident full-row bias for this kv tile.
        start = pl.multiple_of(kv * block_kv, block_kv)
        s = s + bias_ref[0, :, pl.ds(start, block_kv)]   # (1, tk) broadcast add

    # Online (flash) softmax update, fp32 statistics.
    m_prev = m_sc[...]
    m_new = jnp.maximum(m_prev, jnp.max(s, axis=-1, keepdims=True))
    alpha = jnp.exp(m_prev - m_new)                      # rescale previous stats
    p = jnp.exp(s - m_new)                               # unnormalized probabilities

    l_sc[...] = alpha * l_sc[...] + jnp.sum(p, axis=-1, keepdims=True)
    acc_sc[...] = alpha * acc_sc[...] + jnp.dot(
        p.astype(v.dtype), v, preferred_element_type=jnp.float32)
    m_sc[...] = m_new

    @pl.when(kv == pl.num_programs(2) - 1)
    def _():
        # Deferred normalization, once per q tile.  Exact reciprocal on the
        # (tq, 1) denominator (approx reciprocal caused the accuracy failure).
        inv_l = 1.0 / l_sc[...]
        o_ref[0] = (acc_sc[...] * inv_l).astype(o_ref.dtype)


def _round_up(x, m):
    return ((x + m - 1) // m) * m


def attention(query, key, value, mask=None, *, block_q=256, block_kv=512,
              compute_dtype=None):
    """Flash attention matching F.scaled_dot_product_attention(q, k, v, attn_mask=mask).

    query/key/value: (B, S, D); mask: (1, 1, S) bool (True = attend) or None.
    compute_dtype: optional dtype (e.g. jnp.bfloat16) for the MXU operands; softmax
    statistics and accumulation stay fp32 regardless.
    """
    B, S, D = query.shape
    scale = 1.0 / math.sqrt(D)

    # Lane-dense feature dim and tile-aligned sequence.
    Dp = _round_up(max(D, 128), 128)
    s_min = _round_up(S, 128)
    block_q = min(block_q, s_min)
    block_kv = min(block_kv, s_min)
    Sp = _round_up(S, math.lcm(block_q, block_kv))

    cdt = query.dtype if compute_dtype is None else compute_dtype

    def pad_qkv(x):
        return jnp.pad(x.astype(cdt), ((0, 0), (0, Sp - S), (0, Dp - D)))

    qp, kp, vp = pad_qkv(query), pad_qkv(key), pad_qkv(value)

    # Additive fp32 bias over keys (0 = attend, NEG_INF = masked/padded).  Only
    # materialized if there is a mask or sequence padding to neutralize.
    has_bias = (mask is not None) or (Sp != S)

    in_specs = [
        pl.BlockSpec((1, block_q, Dp), lambda b, qi, ki: (b, qi, 0)),    # q
        pl.BlockSpec((1, block_kv, Dp), lambda b, qi, ki: (b, ki, 0)),   # k
        pl.BlockSpec((1, block_kv, Dp), lambda b, qi, ki: (b, ki, 0)),   # v
    ]
    args = [qp, kp, vp]

    if has_bias:
        if mask is None:
            bias = jnp.zeros((1, 1, S), dtype=jnp.float32)
        else:
            bias = jnp.where(mask.reshape(1, 1, S), 0.0, NEG_INF).astype(jnp.float32)
        bias = jnp.pad(bias, ((0, 0), (0, 0), (0, Sp - S)), constant_values=NEG_INF)
        # Whole padded key row stays VMEM-resident (same block every grid step).
        in_specs.append(pl.BlockSpec((1, 1, Sp), lambda b, qi, ki: (0, 0, 0)))
        args.append(bias)

    grid = (B, Sp // block_q, Sp // block_kv)
    kernel = functools.partial(_flash_attention_kernel, scale=scale,
                               block_kv=block_kv, has_bias=has_bias)

    out = pl.pallas_call(
        kernel,
        out_shape=jax.ShapeDtypeStruct((B, Sp, Dp), query.dtype),
        grid_spec=pltpu.PrefetchScalarGridSpec(
            num_scalar_prefetch=0,
            grid=grid,
            in_specs=in_specs,
            out_specs=pl.BlockSpec((1, block_q, Dp), lambda b, qi, ki: (b, qi, 0)),
            scratch_shapes=[
                pltpu.VMEM((block_q, Dp), cdt),           # pre-scaled q tile
                pltpu.VMEM((block_q, 1), jnp.float32),    # running max
                pltpu.VMEM((block_q, 1), jnp.float32),    # running denominator
                pltpu.VMEM((block_q, Dp), jnp.float32),   # unnormalized accumulator
            ],
        ),
        compiler_params=pltpu.CompilerParams(
            dimension_semantics=("parallel", "parallel", "arbitrary")),
    )(*args)

    return out[:, :S, :D]


def _reference(query, key, value, mask):
    # pure-JAX reference of F.scaled_dot_product_attention with a bool mask
    d = query.shape[-1]
    s = jnp.einsum("bqd,bkd->bqk", query, key) / math.sqrt(d)
    if mask is not None:
        s = jnp.where(mask, s, -jnp.inf)
    p = jax.nn.softmax(s, axis=-1)
    return jnp.einsum("bqk,bkd->bqd", p, value)


if __name__ == "__main__":
    batch_size = 1
    feature_dim = 3
    seq_len = 4

    rng = jax.random.PRNGKey(0)
    kq, kk, kv = jax.random.split(rng, 3)

    query = jax.random.normal(kq, (batch_size, seq_len, feature_dim), dtype=jnp.float32)
    key_t = jax.random.normal(kk, (batch_size, seq_len, feature_dim), dtype=jnp.float32)
    value = jax.random.normal(kv, (batch_size, seq_len, feature_dim), dtype=jnp.float32)
    mask = jnp.array([[[1, 1, 1, 0]]], dtype=jnp.bool_)   # (1, 1, S), True = attend

    out = jax.block_until_ready(attention(query, key_t, value, mask))
    ref = _reference(query, key_t, value, mask)

    assert out.shape == (batch_size, seq_len, feature_dim)
    assert bool(jnp.allclose(out, ref, atol=5e-3, rtol=5e-3)), "mismatch vs reference"

    print("KERNEL_OK")
</pallas_src>

<mosaic_0001>
module attributes {stable_mosaic.version = 11 : i64} {
  func.func @_flash_attention_kernel(%arg0: i32, %arg1: i32, %arg2: i32, %arg3: memref<1x128x128xf32, #tpu.memory_space<vmem>>, %arg4: memref<1x128x128xf32, #tpu.memory_space<vmem>>, %arg5: memref<1x128x128xf32, #tpu.memory_space<vmem>>, %arg6: memref<1x1x128xf32, #tpu.memory_space<vmem>>, %arg7: memref<1x128x128xf32, #tpu.memory_space<vmem>>, %arg8: memref<128x128xf32, #tpu.memory_space<vmem>>, %arg9: memref<128x1xf32, #tpu.memory_space<vmem>>, %arg10: memref<128x1xf32, #tpu.memory_space<vmem>>, %arg11: memref<128x128xf32, #tpu.memory_space<vmem>>) attributes {dimension_semantics = [#tpu.dimension_semantics<parallel>, #tpu.dimension_semantics<parallel>, #tpu.dimension_semantics<arbitrary>], iteration_bounds = array<i64: 1, 1, 1>, scalar_prefetch = 0 : i64, scratch_operands = 4 : i64, tpu.core_type = #tpu.core_type<tc>, window_params = [{transform_indices = @transform_0, window_bounds = array<i64: 1, 128, 128>}, {transform_indices = @transform_1, window_bounds = array<i64: 1, 128, 128>}, {transform_indices = @transform_2, window_bounds = array<i64: 1, 128, 128>}, {pipeline_mode = #tpu.pipeline_mode<synchronous>, transform_indices = @transform_3, window_bounds = array<i64: 1, 1, 128>}, {transform_indices = @transform_4, window_bounds = array<i64: 1, 128, 128>}]} {
    %c0_i32 = arith.constant 0 : i32
    %0 = arith.cmpi eq, %arg2, %c0_i32 : i32
    %1 = arith.extui %0 : i1 to i32
    %c0_i32_0 = arith.constant 0 : i32
    %2 = arith.cmpi ne, %1, %c0_i32_0 : i32
    scf.if %2 {
      %c0_27 = arith.constant 0 : index
      %c0_28 = arith.constant 0 : index
      %c0_29 = arith.constant 0 : index
      %41 = vector.load %arg3[%c0_27, %c0_28, %c0_29] : memref<1x128x128xf32, #tpu.memory_space<vmem>>, vector<1x128x128xf32>
      %42 = vector.shape_cast %41 : vector<1x128x128xf32> to vector<128x128xf32>
      %cst_30 = arith.constant 0.577350259 : f32
      %43 = vector.broadcast %cst_30 : f32 to vector<128x128xf32>
      %44 = arith.mulf %42, %43 : vector<128x128xf32>
      %c0_31 = arith.constant 0 : index
      %c0_32 = arith.constant 0 : index
      %45 = vector.load %arg8[%c0_31, %c0_32] : memref<128x128xf32, #tpu.memory_space<vmem>>, vector<128x128xf32>
      tpu.vector_store %arg8[%c0_31, %c0_32], %44 {strides = array<i32>} : memref<128x128xf32, #tpu.memory_space<vmem>>, vector<128x128xf32>,
      %cst_33 = arith.constant -1.000000e+30 : f32
      %46 = vector.broadcast %cst_33 : f32 to vector<128x1xf32>
      %c0_34 = arith.constant 0 : index
      %c0_35 = arith.constant 0 : index
      %47 = vector.load %arg9[%c0_34, %c0_35] : memref<128x1xf32, #tpu.memory_space<vmem>>, vector<128x1xf32>
      tpu.vector_store %arg9[%c0_34, %c0_35], %46 {strides = array<i32>} : memref<128x1xf32, #tpu.memory_space<vmem>>, vector<128x1xf32>,
      %cst_36 = arith.constant 0.000000e+00 : f32
      %48 = vector.broadcast %cst_36 : f32 to vector<128x1xf32>
      %c0_37 = arith.constant 0 : index
      %c0_38 = arith.constant 0 : index
      %49 = vector.load %arg10[%c0_37, %c0_38] : memref<128x1xf32, #tpu.memory_space<vmem>>, vector<128x1xf32>
      tpu.vector_store %arg10[%c0_37, %c0_38], %48 {strides = array<i32>} : memref<128x1xf32, #tpu.memory_space<vmem>>, vector<128x1xf32>,
      %cst_39 = arith.constant 0.000000e+00 : f32
      %50 = vector.broadcast %cst_39 : f32 to vector<128x128xf32>
      %c0_40 = arith.constant 0 : index
      %c0_41 = arith.constant 0 : index
      %51 = vector.load %arg11[%c0_40, %c0_41] : memref<128x128xf32, #tpu.memory_space<vmem>>, vector<128x128xf32>
      tpu.vector_store %arg11[%c0_40, %c0_41], %50 {strides = array<i32>} : memref<128x128xf32, #tpu.memory_space<vmem>>, vector<128x128xf32>,
    } else {
    }
    %c0 = arith.constant 0 : index
    %c0_1 = arith.constant 0 : index
    %3 = vector.load %arg8[%c0, %c0_1] : memref<128x128xf32, #tpu.memory_space<vmem>>, vector<128x128xf32>
    %c0_2 = arith.constant 0 : index
    %c0_3 = arith.constant 0 : index
    %c0_4 = arith.constant 0 : index
    %4 = vector.load %arg4[%c0_2, %c0_3, %c0_4] : memref<1x128x128xf32, #tpu.memory_space<vmem>>, vector<1x128x128xf32>
    %5 = vector.shape_cast %4 : vector<1x128x128xf32> to vector<128x128xf32>
    %c0_5 = arith.constant 0 : index
    %c0_6 = arith.constant 0 : index
    %c0_7 = arith.constant 0 : index
    %6 = vector.load %arg5[%c0_5, %c0_6, %c0_7] : memref<1x128x128xf32, #tpu.memory_space<vmem>>, vector<1x128x128xf32>
    %7 = vector.shape_cast %6 : vector<1x128x128xf32> to vector<128x128xf32>
    %cst = arith.constant dense<0.000000e+00> : vector<128x128xf32>
    %8 = tpu.matmul %3, %5, %cst {dimension_numbers = #tpu.dot_dimension_numbers<[1], [1], [0], [0], [0, 0, 1, 0], [], []>} : vector<128x128xf32>, vector<128x128xf32>, vector<128x128xf32> -> vector<128x128xf32>
    %c128_i32 = arith.constant 128 : i32
    %9 = arith.muli %arg2, %c128_i32 : i32
    %10 = tpu.assume_multiple %9, 128 : i32
    %c0_8 = arith.constant 0 : index
    %c0_9 = arith.constant 0 : index
    %11 = arith.index_cast %10 : i32 to index
    %12 = vector.load %arg6[%c0_8, %c0_9, %11] : memref<1x1x128xf32, #tpu.memory_space<vmem>>, vector<1x1x128xf32>
    %13 = vector.shape_cast %12 : vector<1x1x128xf32> to vector<1x128xf32>
    %14 = vector.broadcast %13 : vector<1x128xf32> to vector<128x128xf32>
    %15 = arith.addf %8, %14 : vector<128x128xf32>
    %c0_10 = arith.constant 0 : index
    %c0_11 = arith.constant 0 : index
    %16 = vector.load %arg9[%c0_10, %c0_11] : memref<128x1xf32, #tpu.memory_space<vmem>>, vector<128x1xf32>
    %cst_12 = arith.constant dense<0xFF800000> : vector<128xf32>
    %17 = vector.multi_reduction <maximumf>, %15, %cst_12 [1] : vector<128x128xf32> to vector<128xf32>
    %18 = vector.shape_cast %17 : vector<128xf32> to vector<128x1xf32>
    %19 = arith.maximumf %16, %18 : vector<128x1xf32>
    %20 = arith.subf %16, %19 : vector<128x1xf32>
    %21 = math.exp %20 : vector<128x1xf32>
    %22 = vector.broadcast %19 : vector<128x1xf32> to vector<128x128xf32>
    %23 = arith.subf %15, %22 : vector<128x128xf32>
    %24 = math.exp %23 : vector<128x128xf32>
    %c0_13 = arith.constant 0 : index
    %c0_14 = arith.constant 0 : index
    %25 = vector.load %arg10[%c0_13, %c0_14] : memref<128x1xf32, #tpu.memory_space<vmem>>, vector<128x1xf32>
    %26 = arith.mulf %21, %25 : vector<128x1xf32>
    %cst_15 = arith.constant dense<0.000000e+00> : vector<128xf32>
    %27 = vector.multi_reduction <add>, %24, %cst_15 [1] : vector<128x128xf32> to vector<128xf32>
    %28 = vector.shape_cast %27 : vector<128xf32> to vector<128x1xf32>
    %29 = arith.addf %26, %28 : vector<128x1xf32>
    %c0_16 = arith.constant 0 : index
    %c0_17 = arith.constant 0 : index
    %30 = vector.load %arg10[%c0_16, %c0_17] : memref<128x1xf32, #tpu.memory_space<vmem>>, vector<128x1xf32>
    tpu.vector_store %arg10[%c0_16, %c0_17], %29 {strides = array<i32>} : memref<128x1xf32, #tpu.memory_space<vmem>>, vector<128x1xf32>,
    %c0_18 = arith.constant 0 : index
    %c0_19 = arith.constant 0 : index
    %31 = vector.load %arg11[%c0_18, %c0_19] : memref<128x128xf32, #tpu.memory_space<vmem>>, vector<128x128xf32>
    %32 = vector.broadcast %21 : vector<128x1xf32> to vector<128x128xf32>
    %33 = arith.mulf %32, %31 : vector<128x128xf32>
    %cst_20 = arith.constant dense<0.000000e+00> : vector<128x128xf32>
    %34 = tpu.matmul %24, %7, %cst_20 {dimension_numbers = #tpu.dot_dimension_numbers<[1], [0], [0], [1], [0, 0, 1, 1], [], []>} : vector<128x128xf32>, vector<128x128xf32>, vector<128x128xf32> -> vector<128x128xf32>
    %35 = arith.addf %33, %34 : vector<128x128xf32>
    %c0_21 = arith.constant 0 : index
    %c0_22 = arith.constant 0 : index
    %36 = vector.load %arg11[%c0_21, %c0_22] : memref<128x128xf32, #tpu.memory_space<vmem>>, vector<128x128xf32>
    tpu.vector_store %arg11[%c0_21, %c0_22], %35 {strides = array<i32>} : memref<128x128xf32, #tpu.memory_space<vmem>>, vector<128x128xf32>,
    %c0_23 = arith.constant 0 : index
    %c0_24 = arith.constant 0 : index
    %37 = vector.load %arg9[%c0_23, %c0_24] : memref<128x1xf32, #tpu.memory_space<vmem>>, vector<128x1xf32>
    tpu.vector_store %arg9[%c0_23, %c0_24], %19 {strides = array<i32>} : memref<128x1xf32, #tpu.memory_space<vmem>>, vector<128x1xf32>,
    %c0_i32_25 = arith.constant 0 : i32
    %38 = arith.cmpi eq, %arg2, %c0_i32_25 : i32
    %39 = arith.extui %38 : i1 to i32
    %c0_i32_26 = arith.constant 0 : i32
    %40 = arith.cmpi ne, %39, %c0_i32_26 : i32
    scf.if %40 {
      %c0_27 = arith.constant 0 : index
      %c0_28 = arith.constant 0 : index
      %41 = vector.load %arg10[%c0_27, %c0_28] : memref<128x1xf32, #tpu.memory_space<vmem>>, vector<128x1xf32>
      %cst_29 = arith.constant 1.000000e+00 : f32
      %42 = vector.broadcast %cst_29 : f32 to vector<128x1xf32>
      %43 = arith.divf %42, %41 : vector<128x1xf32>
      %c0_30 = arith.constant 0 : index
      %c0_31 = arith.constant 0 : index
      %44 = vector.load %arg11[%c0_30, %c0_31] : memref<128x128xf32, #tpu.memory_space<vmem>>, vector<128x128xf32>
      %45 = vector.broadcast %43 : vector<128x1xf32> to vector<128x128xf32>
      %46 = arith.mulf %44, %45 : vector<128x128xf32>
      %c0_32 = arith.constant 0 : index
      %c0_33 = arith.constant 0 : index
      %c0_34 = arith.constant 0 : index
      %47 = vector.load %arg7[%c0_32, %c0_33, %c0_34] : memref<1x128x128xf32, #tpu.memory_space<vmem>>, vector<1x128x128xf32>
      %48 = vector.shape_cast %47 : vector<1x128x128xf32> to vector<128x128xf32>
      %49 = vector.shape_cast %46 : vector<128x128xf32> to vector<1x128x128xf32>
      tpu.vector_store %arg7[%c0_32, %c0_33, %c0_34], %49 {strides = array<i32>} : memref<1x128x128xf32, #tpu.memory_space<vmem>>, vector<1x128x128xf32>,
    } else {
    }
    return
  }
  func.func @transform_0(%arg0: i32, %arg1: i32, %arg2: i32) -> (i32, i32, i32) {
    %c0_i32 = arith.constant 0 : i32
    %c0_i32_0 = arith.constant 0 : i32
    return %arg0, %arg1, %c0_i32 : i32, i32, i32
  }
  func.func @transform_1(%arg0: i32, %arg1: i32, %arg2: i32) -> (i32, i32, i32) {
    %c0_i32 = arith.constant 0 : i32
    %c0_i32_0 = arith.constant 0 : i32
    return %arg0, %arg2, %c0_i32 : i32, i32, i32
  }
  func.func @transform_2(%arg0: i32, %arg1: i32, %arg2: i32) -> (i32, i32, i32) {
    %c0_i32 = arith.constant 0 : i32
    %c0_i32_0 = arith.constant 0 : i32
    return %arg0, %arg2, %c0_i32 : i32, i32, i32
  }
  func.func @transform_3(%arg0: i32, %arg1: i32, %arg2: i32) -> (i32, i32, i32) {
    %c0_i32 = arith.constant 0 : i32
    %c0_i32_0 = arith.constant 0 : i32
    %c0_i32_1 = arith.constant 0 : i32
    %c0_i32_2 = arith.constant 0 : i32
    return %c0_i32, %c0_i32_0, %c0_i32_1 : i32, i32, i32
  }
  func.func @transform_4(%arg0: i32, %arg1: i32, %arg2: i32) -> (i32, i32, i32) {
    %c0_i32 = arith.constant 0 : i32
    %c0_i32_0 = arith.constant 0 : i32
    return %arg0, %arg1, %c0_i32 : i32, i32, i32
  }
}

</mosaic_0001>

<bundles_post_ra>
// kernel: tpu_custom_call.1
= control target key start
LH: loop header
LB: loop body
LE: loop exit
PB: predicated region body
PF: predicated region fallthrough
CT: control target
= control target key end

     0   :  { %9 = vsyncpa [#allocation7], 0  ;;  %s2028_s0 = inlined_call_operand.hbm [shape: f32[1,128,128], index: 0, kind: input, shape index: {}]   ;;  %s2029_s1 = inlined_call_operand.hbm [shape: f32[1,128,128], index: 1, kind: input, shape index: {}]   ;;  %s2030_s2 = inlined_call_operand.hbm [shape: f32[1,128,128], index: 2, kind: input, shape index: {}]   ;;  %s2031_s3 = inlined_call_operand.vmem [shape: f32[1,1,128], index: 3, kind: input, shape index: {}]   ;;  %s2032_s4 = inlined_call_operand.hbm [shape: f32[1,128,128], index: 4, kind: output, shape index: {}]  }
   0x1   :  { %10 = vsyncpa [#allocation10], 0 }
   0x2   :  { %11 = vsyncpa [#allocation8], 0  ;;  %s1574_s15 = smov [#allocation9]   ;;  %s1575_s17 = smov [#allocation6]  }
   0x3   :  { %s29_s16 = sshll.u32 %s1574_s15, 4  ;;  %s17_s18 = sshll.u32 %s1575_s17, 4  ;;  %s30_s16 = int_to_ptr.vmem [resolvable:$true] %s29_s16  ;;  %s18_s18 = int_to_ptr.vmem [resolvable:$true] %s17_s18 }
   0x4   :  { %s1496_s19 = scalar_lea.vmem %s30_s16, 2048  ;;  %p1501_p1 = scmp.lt.s32.totalorder %s30_s16, %s30_s16 }
   0x5   :  { %p1497_p0 = scmp.ne.s32.totalorder %s30_s16, %s1496_s19  ;;  %p1502_p2 = scmp.lt.s32.totalorder %s1496_s19, %s1496_s19 }
   0x7   :  { %p1503_p3 = por %p1502_p2, %p1501_p1 }
   0x9   :  { %p1504_p4 = pnand %p1503_p3, %p1497_p0 }
   0xb   :  { %1507 = shalt.err (!%p1504_p4)
}
   0xc   :  { %s1576_s20 = smov 128   ;;  %s1577_s21 = smov 8  }
   0xd   :  { %35 = dma.hbm_to_vmem [thread:$0]  %s2029_s1, 2048, %s30_s16, [#allocation10], %s1576_s20, %s1576_s20, %s1577_s21  }
   0xe   :  { %s1516_s24 = scalar_lea.vmem %s18_s18, 2048  ;;  %p1521_p6 = scmp.lt.s32.totalorder %s18_s18, %s18_s18 }
   0xf   :  { %p1517_p5 = scmp.ne.s32.totalorder %s18_s18, %s1516_s24  ;;  %p1522_p7 = scmp.lt.s32.totalorder %s1516_s24, %s1516_s24 }
  0x11   :  { %p1523_p8 = por %p1522_p7, %p1521_p6 }
  0x13   :  { %p1524_p9 = pnand %p1523_p8, %p1517_p5 }
  0x15   :  { %1527 = shalt.err (!%p1524_p9)
}
  0x16   :  { %23 = dma.hbm_to_vmem [thread:$0]  %s2028_s0, 2048, %s18_s18, [#allocation7], %s1576_s20, %s1576_s20, %s1577_s21  }
  0x17   :  { %s1578_s27 = smov [#allocation11]  }
  0x18   :  { %s41_s28 = sshll.u32 %s1578_s27, 4  ;;  %s42_s28 = int_to_ptr.vmem [resolvable:$true] %s41_s28 }
  0x19   :  { %s1536_s29 = scalar_lea.vmem %s42_s28, 2048  ;;  %p1541_p11 = scmp.lt.s32.totalorder %s42_s28, %s42_s28 }
  0x1a   :  { %p1537_p10 = scmp.ne.s32.totalorder %s42_s28, %s1536_s29  ;;  %p1542_p12 = scmp.lt.s32.totalorder %s1536_s29, %s1536_s29 }
  0x1c   :  { %p1543_p13 = por %p1542_p12, %p1541_p11 }
  0x1e   :  { %p1544_p0 = pnand %p1543_p13, %p1537_p10 }
  0x20   :  { %1547 = shalt.err (!%p1544_p0)
}
  0x21   :  { %47 = dma.hbm_to_vmem [thread:$0]  %s2030_s2, 2048, %s42_s28, [#allocation10], %s1576_s20, %s1576_s20, %s1577_s21  }
  0x22   :  { %1568 = dma.done.wait [#allocation7], 2048  }
  0x23   :  { %1569 = vsyncadd [#allocation7], 4294965248 }
  0x24   :  { %1570 = dma.done.wait [#allocation10], 4096  }
  0x25   :  { %1571 = vsyncadd [#allocation10], 4294963200  ;;  %v191_v0 = vld [vmem:[#allocation9 + $0x78] sm:$0xff]  ;;  %v190_v1 = vld [vmem:[#allocation9 + $0x70] sm:$0xff]  ;;  %vm111_vm0 = vcmask 7168  }
  0x26   :  { %1269 = vmatprep.subr.mxu0 %v191_v0  ;;  %v189_v2 = vld [vmem:[#allocation9 + $0x68] sm:$0xff]  ;;  %v63_v3 = vld [vmem:[#allocation6] sm:$0xff]  ;;  %v187_v6 = vld [vmem:[#allocation9 + $0x58] sm:$0xff]  ;;  %v1579_v48 = vmov -1e+30  }
  0x27   :  { %1270 = vmatpush3.xpose.msra.mxu0 %v191_v0  ;;  %v79_v4 = vmul.f32 0.57735026, %v63_v3  ;;  %v188_v5 = vld [vmem:[#allocation9 + $0x60] sm:$0xff]  ;;  %v186_v7 = vld [vmem:[#allocation9 + $0x50] sm:$0xff]  ;;  %v185_v8 = vld [vmem:[#allocation9 + $0x48] sm:$0xff]  ;;  %112 = vst.msk [vmem:[#allocation3] sm:$0xff] %vm111_vm0, %v1579_v48 }
  0x28   :  { %1271 = vmatprep.subr.mxu0 %v190_v1  ;;  %v184_v9 = vld [vmem:[#allocation9 + $0x40] sm:$0xff]  ;;  %v183_v10 = vld [vmem:[#allocation9 + $0x38] sm:$0xff]  ;;  %v182_v11 = vld [vmem:[#allocation9 + $0x30] sm:$0xff]  ;;  %113 = vst.msk [vmem:[#allocation3 + $0x8] sm:$0xff] %vm111_vm0, %v1579_v48  ;;  %v1580_v3 = vmov 0  }
  0x29   :  { %1301 = vmatprep.mubr.f32.mxu0 %v79_v4  ;;  %v181_v12 = vld [vmem:[#allocation9 + $0x28] sm:$0xff]  ;;  %v180_v13 = vld [vmem:[#allocation9 + $0x20] sm:$0xff]  ;;  %v179_v14 = vld [vmem:[#allocation9 + $0x18] sm:$0xff]  ;;  %114 = vst.msk [vmem:[#allocation3 + $0x10] sm:$0xff] %vm111_vm0, %v1579_v48  ;;  %1390 = vset.pattern.permute.xlu0 %v1580_v3 }
  0x2a   :  { %v178_v15 = vld [vmem:[#allocation9 + $0x10] sm:$0xff]  ;;  %v177_v16 = vld [vmem:[#allocation9 + $0x8] sm:$0xff]  ;;  %v176_v17 = vld [vmem:[#allocation9] sm:$0xff]  ;;  %115 = vst.msk [vmem:[#allocation3 + $0x18] sm:$0xff] %vm111_vm0, %v1579_v48  ;;  %1391 = vset.pattern.permute.xlu1 %v1580_v3 }
  0x2b   :  { %1272 = vmatpush3.xpose.msra.mxu0 %v190_v1  ;;  %v64_v18 = vld [vmem:[#allocation6 + $0x8] sm:$0xff]  ;;  %v65_v19 = vld [vmem:[#allocation6 + $0x10] sm:$0xff]  ;;  %v66_v22 = vld [vmem:[#allocation6 + $0x18] sm:$0xff]  ;;  %116 = vst.msk [vmem:[#allocation3 + $0x20] sm:$0xff] %vm111_vm0, %v1579_v48 }
  0x2c   :  { %1273 = vmatprep.subr.mxu0 %v189_v2  ;;  %v80_v20 = vmul.f32 0.57735026, %v64_v18  ;;  %v81_v21 = vmul.f32 0.57735026, %v65_v19  ;;  %v67_v23 = vld [vmem:[#allocation6 + $0x20] sm:$0xff]  ;;  %v68_v26 = vld [vmem:[#allocation6 + $0x28] sm:$0xff] }
  0x2d   :  { %v82_v24 = vmul.f32 0.57735026, %v66_v22  ;;  %v83_v25 = vmul.f32 0.57735026, %v67_v23  ;;  %v69_v27 = vld [vmem:[#allocation6 + $0x30] sm:$0xff]  ;;  %v70_v30 = vld [vmem:[#allocation6 + $0x38] sm:$0xff] }
  0x2e   :  { %v84_v28 = vmul.f32 0.57735026, %v68_v26  ;;  %v85_v29 = vmul.f32 0.57735026, %v69_v27  ;;  %v71_v31 = vld [vmem:[#allocation6 + $0x40] sm:$0xff]  ;;  %v72_v34 = vld [vmem:[#allocation6 + $0x48] sm:$0xff] }
  0x2f   :  { %1274 = vmatpush3.xpose.msra.mxu0 %v189_v2  ;;  %v86_v32 = vmul.f32 0.57735026, %v70_v30  ;;  %v87_v33 = vmul.f32 0.57735026, %v71_v31  ;;  %v73_v35 = vld [vmem:[#allocation6 + $0x50] sm:$0xff]  ;;  %v74_v38 = vld [vmem:[#allocation6 + $0x58] sm:$0xff] }
  0x30   :  { %1275 = vmatprep.subr.mxu0 %v188_v5  ;;  %v88_v36 = vmul.f32 0.57735026, %v72_v34  ;;  %v89_v37 = vmul.f32 0.57735026, %v73_v35  ;;  %v75_v39 = vld [vmem:[#allocation6 + $0x60] sm:$0xff]  ;;  %v76_v42 = vld [vmem:[#allocation6 + $0x68] sm:$0xff] }
  0x31   :  { %v90_v40 = vmul.f32 0.57735026, %v74_v38  ;;  %v91_v41 = vmul.f32 0.57735026, %v75_v39  ;;  %v77_v43 = vld [vmem:[#allocation6 + $0x70] sm:$0xff]  ;;  %v78_v46 = vld [vmem:[#allocation6 + $0x78] sm:$0xff] }
  0x32   :  { %v92_v44 = vmul.f32 0.57735026, %v76_v42  ;;  %v93_v45 = vmul.f32 0.57735026, %v77_v43  ;;  %v94_v47 = vmul.f32 0.57735026, %v78_v46 }
  0x33   :  { %1276 = vmatpush3.xpose.msra.mxu0 %v188_v5  ;;  %117 = vst.msk [vmem:[#allocation3 + $0x28] sm:$0xff] %vm111_vm0, %v1579_v48  ;;  %118 = vst.msk [vmem:[#allocation3 + $0x30] sm:$0xff] %vm111_vm0, %v1579_v48  ;;  %v1645_v50 = vld [vmem:[%s2031_s3] ss:$0 sm:$0xff]  ;;  %v205_v22 = vld [vmem:[#allocation11 + $0x68] sm:$0xff]  ;;  %s1582_s3 = smov [#allocation12]  }
  0x34   :  { %1277 = vmatprep.subr.mxu0 %v187_v6  ;;  %119 = vst.msk [vmem:[#allocation3 + $0x38] sm:$0xff] %vm111_vm0, %v1579_v48  ;;  %120 = vst.msk [vmem:[#allocation3 + $0x40] sm:$0xff] %vm111_vm0, %v1579_v48  ;;  %v204_v23 = vld [vmem:[#allocation11 + $0x60] sm:$0xff]  ;;  %v202_v26 = vld [vmem:[#allocation11 + $0x50] sm:$0xff]  ;;  %s1190_s5 = sshll.u32 %s1582_s3, 4  ;;  %s1191_s5 = int_to_ptr.vmem [resolvable:$true] %s1190_s5 }
  0x35   :  { %121 = vst.msk [vmem:[#allocation3 + $0x48] sm:$0xff] %vm111_vm0, %v1579_v48  ;;  %122 = vst.msk [vmem:[#allocation3 + $0x50] sm:$0xff] %vm111_vm0, %v1579_v48  ;;  %v199_v38 = vld [vmem:[#allocation11 + $0x38] sm:$0xff]  ;;  %v1753_v42 = vld [vmem:[#allocation3 + $0x20] sm:$0xff]  ;;  %s1548_s6 = scalar_lea.vmem %s1191_s5, 2048  ;;  %p1553_p2 = scmp.lt.s32.totalorder %s1191_s5, %s1191_s5 }
  0x36   :  { %123 = vst.msk [vmem:[#allocation3 + $0x58] sm:$0xff] %vm111_vm0, %v1579_v48  ;;  %124 = vst.msk [vmem:[#allocation3 + $0x60] sm:$0xff] %vm111_vm0, %v1579_v48  ;;  %v198_v43 = vld [vmem:[#allocation11 + $0x30] sm:$0xff]  ;;  %p1549_p1 = scmp.ne.s32.totalorder %s1191_s5, %s1548_s6  ;;  %p1554_p3 = scmp.lt.s32.totalorder %s1548_s6, %s1548_s6 }
  0x37   :  { %1278 = vmatpush3.xpose.msra.mxu0 %v187_v6  ;;  %125 = vst.msk [vmem:[#allocation3 + $0x68] sm:$0xff] %vm111_vm0, %v1579_v48  ;;  %126 = vst.msk [vmem:[#allocation3 + $0x70] sm:$0xff] %vm111_vm0, %v1579_v48 }
  0x38   :  { %1279 = vmatprep.subr.mxu0 %v186_v7  ;;  %127 = vst.msk [vmem:[#allocation3 + $0x78] sm:$0xff] %vm111_vm0, %v1579_v48  ;;  %v197_v48 = vld [vmem:[#allocation11 + $0x28] sm:$0xff]  ;;  %p1555_p4 = por %p1554_p3, %p1553_p2 }
  0x3a   :  { %v1763_v46 = vld [vmem:[#allocation3 + $0x28] sm:$0xff]  ;;  %p1556_p5 = pnand %p1555_p4, %p1549_p1 }
  0x3b   :  { %1280 = vmatpush3.xpose.msra.mxu0 %v186_v7 }
  0x3c   :  { %1281 = vmatprep.subr.mxu0 %v185_v8 }
  0x3f   :  { %1282 = vmatpush3.xpose.msra.mxu0 %v185_v8 }
  0x40   :  { %1283 = vmatprep.subr.mxu0 %v184_v9 }
  0x43   :  { %1284 = vmatpush3.xpose.msra.mxu0 %v184_v9 }
  0x44   :  { %1285 = vmatprep.subr.mxu0 %v183_v10 }
  0x47   :  { %1286 = vmatpush3.xpose.msra.mxu0 %v183_v10 }
  0x48   :  { %1287 = vmatprep.subr.mxu0 %v182_v11 }
  0x4b   :  { %1288 = vmatpush3.xpose.msra.mxu0 %v182_v11 }
  0x4c   :  { %1289 = vmatprep.subr.mxu0 %v181_v12 }
  0x4f   :  { %1290 = vmatpush3.xpose.msra.mxu0 %v181_v12 }
  0x50   :  { %1291 = vmatprep.subr.mxu0 %v180_v13 }
  0x53   :  { %1292 = vmatpush3.xpose.msra.mxu0 %v180_v13 }
  0x54   :  { %1293 = vmatprep.subr.mxu0 %v179_v14 }
  0x57   :  { %1294 = vmatpush3.xpose.msra.mxu0 %v179_v14 }
  0x58   :  { %1295 = vmatprep.subr.mxu0 %v178_v15 }
  0x5b   :  { %1296 = vmatpush3.xpose.msra.mxu0 %v178_v15 }
  0x5c   :  { %1297 = vmatprep.subr.mxu0 %v177_v16 }
  0x5f   :  { %1298 = vmatpush3.xpose.msra.mxu0 %v177_v16  ;;  %v1581_v16 = vmov 0.0  }
  0x60   :  { %1299 = vmatprep.subr.mxu0 %v176_v17  ;;  %128 = vst.msk [vmem:[#allocation4] sm:$0xff] %vm111_vm0, %v1581_v16  ;;  %129 = vst.msk [vmem:[#allocation4 + $0x8] sm:$0xff] %vm111_vm0, %v1581_v16 }
  0x61   :  { %130 = vst.msk [vmem:[#allocation4 + $0x10] sm:$0xff] %vm111_vm0, %v1581_v16  ;;  %131 = vst.msk [vmem:[#allocation4 + $0x18] sm:$0xff] %vm111_vm0, %v1581_v16 }
  0x62   :  { %132 = vst.msk [vmem:[#allocation4 + $0x20] sm:$0xff] %vm111_vm0, %v1581_v16  ;;  %133 = vst.msk [vmem:[#allocation4 + $0x28] sm:$0xff] %vm111_vm0, %v1581_v16 }
  0x63   :  { %1300 = vmatpush3.xpose.msra.mxu0 %v176_v17  ;;  %134 = vst.msk [vmem:[#allocation4 + $0x30] sm:$0xff] %vm111_vm0, %v1581_v16  ;;  %135 = vst.msk [vmem:[#allocation4 + $0x38] sm:$0xff] %vm111_vm0, %v1581_v16 }
  0x64   :  { %136 = vst.msk [vmem:[#allocation4 + $0x40] sm:$0xff] %vm111_vm0, %v1581_v16  ;;  %137 = vst.msk [vmem:[#allocation4 + $0x48] sm:$0xff] %vm111_vm0, %v1581_v16 }
  0x65   :  { %138 = vst.msk [vmem:[#allocation4 + $0x50] sm:$0xff] %vm111_vm0, %v1581_v16  ;;  %139 = vst.msk [vmem:[#allocation4 + $0x58] sm:$0xff] %vm111_vm0, %v1581_v16 }
  0x66   :  { %1302 = vmatmul.mubr.f32.vlgmr.msra.gmra.mxu0 %v80_v20  ;;  %140 = vst.msk [vmem:[#allocation4 + $0x60] sm:$0xff] %vm111_vm0, %v1581_v16  ;;  %141 = vst.msk [vmem:[#allocation4 + $0x68] sm:$0xff] %vm111_vm0, %v1581_v16  ;;  %v207_v20 = vld [vmem:[#allocation11 + $0x78] sm:$0xff] }
  0x67   :  { %1304 = vmatprep.mubr.f32.mxu0 %v81_v21  ;;  %142 = vst.msk [vmem:[#allocation4 + $0x70] sm:$0xff] %vm111_vm0, %v1581_v16  ;;  %143 = vst.msk [vmem:[#allocation4 + $0x78] sm:$0xff] %vm111_vm0, %v1581_v16  ;;  %v206_v21 = vld [vmem:[#allocation11 + $0x70] sm:$0xff]  ;;  %1325 = vmatprep.subr.mxu1 %v207_v20  ;;  %v1801_v16 = vld [vmem:[#allocation3 + $0x48] sm:$0xff] }
  0x68   :  { %1326 = vmatpush3.msra.mxu1 %v207_v20  ;;  %v193_v20 = vld [vmem:[#allocation11 + $0x8] sm:$0xff] }
  0x69   :  { %1327 = vmatprep.subr.mxu1 %v206_v21 }
  0x6a   :  { %1305 = vmatmul.mubr.f32.gmra.mxu0 %v82_v24  ;;  %1328 = vmatpush3.msra.mxu1 %v206_v21  ;;  %v203_v24 = vld [vmem:[#allocation11 + $0x58] sm:$0xff] }
  0x6b   :  { %1307 = vmatprep.mubr.f32.mxu0 %v83_v25  ;;  %1329 = vmatprep.subr.mxu1 %v205_v22  ;;  %v1727_v25 = vld [vmem:[#allocation3] sm:$0xff] }
  0x6c   :  { %1330 = vmatpush3.msra.mxu1 %v205_v22 }
  0x6d   :  { %1331 = vmatprep.subr.mxu1 %v204_v23 }
  0x6e   :  { %1308 = vmatmul.mubr.f32.gmra.mxu0 %v84_v28  ;;  %1332 = vmatpush3.msra.mxu1 %v204_v23  ;;  %v1729_v28 = vld [vmem:[#allocation3 + $0x18] sm:$0xff] }
  0x6f   :  { %1310 = vmatprep.mubr.f32.mxu0 %v85_v29  ;;  %1333 = vmatprep.subr.mxu1 %v203_v24  ;;  %v201_v29 = vld [vmem:[#allocation11 + $0x48] sm:$0xff] }
  0x70   :  { %1334 = vmatpush3.msra.mxu1 %v203_v24  ;;  %v1810_v24 = vld [vmem:[#allocation3 + $0x50] sm:$0xff] }
  0x71   :  { %1335 = vmatprep.subr.mxu1 %v202_v26 }
  0x72   :  { %1311 = vmatmul.mubr.f32.gmra.mxu0 %v86_v32  ;;  %1336 = vmatpush3.msra.mxu1 %v202_v26  ;;  %v1734_v32 = vld [vmem:[#allocation3 + $0x8] sm:$0xff]  ;;  %v192_v26 = vld [vmem:[#allocation11] sm:$0xff] }
  0x73   :  { %1313 = vmatprep.mubr.f32.mxu0 %v87_v33  ;;  %1337 = vmatprep.subr.mxu1 %v201_v29  ;;  %v200_v33 = vld [vmem:[#allocation11 + $0x40] sm:$0xff] }
  0x74   :  { %1338 = vmatpush3.msra.mxu1 %v201_v29 }
  0x75   :  { %1339 = vmatprep.subr.mxu1 %v200_v33 }
  0x76   :  { %1314 = vmatmul.mubr.f32.gmra.mxu0 %v88_v36  ;;  %1340 = vmatpush3.msra.mxu1 %v200_v33 }
  0x77   :  { %1316 = vmatprep.mubr.f32.mxu0 %v89_v37  ;;  %v1744_v37 = vld [vmem:[#allocation3 + $0x10] sm:$0xff]  ;;  %1341 = vmatprep.subr.mxu1 %v199_v38 }
  0x78   :  { %1342 = vmatpush3.msra.mxu1 %v199_v38 }
  0x79   :  { %1343 = vmatprep.subr.mxu1 %v198_v43 }
  0x7a   :  { %1317 = vmatmul.mubr.f32.gmra.mxu0 %v90_v40  ;;  %1344 = vmatpush3.msra.mxu1 %v198_v43  ;;  %v1830_v43 = vld [vmem:[#allocation3 + $0x60] sm:$0xff] }
  0x7b   :  { %1319 = vmatprep.mubr.f32.mxu0 %v91_v41  ;;  %1345 = vmatprep.subr.mxu1 %v197_v48 }
  0x7c   :  { %1346 = vmatpush3.msra.mxu1 %v197_v48 }
  0x7e   :  { %1320 = vmatmul.mubr.f32.gmra.mxu0 %v92_v44 }
  0x7f   :  { %1322 = vmatprep.mubr.f32.mxu0 %v93_v45 }
  0x82   :  { %1323 = vmatmul.mubr.f32.gmra.mxu0 %v94_v47 }
 0x126   :  { %v1303_v49 = vpop.f32.mrf.mxu0 }
 0x127   :  { %v1655_v56 = vadd.f32 %v1303_v49, %v1645_v50 }
 0x128   :  { %v285_v51 = vpop.f32.mrf.mxu0 }
 0x129   :  { %v1648_v52 = vadd.f32 %v1645_v50, %v285_v51 }
 0x12a   :  { %v1306_v53 = vpop.f32.mrf.mxu0 }
 0x12b   :  { %v1651_v54 = vadd.f32 %v1306_v53, %v1645_v50  ;;  %380 = vmax.xlane.f32.xlu0 %v1648_v52  ;;  %v1772_v53 = vld [vmem:[#allocation3 + $0x30] sm:$0xff] }
 0x12c   :  { %v295_v55 = vpop.f32.mrf.mxu0 }
 0x12d   :  { %386 = vmax.xlane.f32.xlu1 %v1651_v54  ;;  %v1659_v57 = vadd.f32 %v1645_v50, %v295_v55  ;;  %v196_v55 = vld [vmem:[#allocation11 + $0x20] sm:$0xff] }
 0x12e   :  { %v1309_v58 = vpop.f32.mrf.mxu0  ;;  %1347 = vmatprep.subr.mxu1 %v196_v55 }
 0x12f   :  { %382 = vmax.xlane.f32.xlu0 %v1655_v56  ;;  %v1664_v60 = vadd.f32 %v1309_v58, %v1645_v50  ;;  %1348 = vmatpush3.msra.mxu1 %v196_v55 }
 0x130   :  { %v305_v59 = vpop.f32.mrf.mxu0 }
 0x131   :  { %384 = vmax.xlane.f32.xlu1 %v1659_v57  ;;  %v1667_v61 = vadd.f32 %v1645_v50, %v305_v59 }
 0x132   :  { %v1312_v62 = vpop.f32.mrf.mxu0 }
 0x133   :  { %388 = vmax.xlane.f32.xlu0 %v1667_v61  ;;  %v1672_v0 = vadd.f32 %v1312_v62, %v1645_v50  ;;  %v1782_v62 = vld [vmem:[#allocation3 + $0x38] sm:$0xff] }
 0x134   :  { %v315_v63 = vpop.f32.mrf.mxu0 }
 0x135   :  { %390 = vmax.xlane.f32.xlu1 %v1664_v60  ;;  %v1675_v1 = vadd.f32 %v1645_v50, %v315_v63 }
 0x136   :  { %v1315_v2 = vpop.f32.mrf.mxu0 }
 0x137   :  { %392 = vmax.xlane.f32.xlu0 %v1675_v1  ;;  %v1680_v5 = vadd.f32 %v1315_v2, %v1645_v50  ;;  %v195_v2 = vld [vmem:[#allocation11 + $0x18] sm:$0xff] }
 0x138   :  { %v325_v4 = vpop.f32.mrf.mxu0  ;;  %1349 = vmatprep.subr.mxu1 %v195_v2 }
 0x139   :  { %394 = vmax.xlane.f32.xlu1 %v1672_v0  ;;  %v1683_v6 = vadd.f32 %v1645_v50, %v325_v4  ;;  %1350 = vmatpush3.msra.mxu1 %v195_v2 }
 0x13a   :  { %v1318_v7 = vpop.f32.mrf.mxu0 }
 0x13b   :  { %396 = vmax.xlane.f32.xlu0 %v1683_v6  ;;  %v1688_v9 = vadd.f32 %v1318_v7, %v1645_v50 }
 0x13c   :  { %v335_v8 = vpop.f32.mrf.mxu0 }
 0x13d   :  { %398 = vmax.xlane.f32.xlu1 %v1680_v5  ;;  %v1691_v10 = vadd.f32 %v1645_v50, %v335_v8  ;;  %v1791_v8 = vld [vmem:[#allocation3 + $0x40] sm:$0xff] }
 0x13e   :  { %v1321_v11 = vpop.f32.mrf.mxu0 }
 0x13f   :  { %400 = vmax.xlane.f32.xlu0 %v1691_v10  ;;  %v1696_v13 = vadd.f32 %v1321_v11, %v1645_v50  ;;  %v194_v11 = vld [vmem:[#allocation11 + $0x10] sm:$0xff] }
 0x140   :  { %v345_v12 = vpop.f32.mrf.mxu0  ;;  %1351 = vmatprep.subr.mxu1 %v194_v11 }
 0x141   :  { %402 = vmax.xlane.f32.xlu1 %v1688_v9  ;;  %v1699_v14 = vadd.f32 %v1645_v50, %v345_v12  ;;  %1352 = vmatpush3.msra.mxu1 %v194_v11  ;;  %v1850_v11 = vld [vmem:[#allocation3 + $0x70] sm:$0xff] }
 0x142   :  { %v1324_v15 = vpop.f32.mrf.mxu0  ;;  %1353 = vmatprep.subr.mxu1 %v193_v20 }
 0x143   :  { %404 = vmax.xlane.f32.xlu0 %v1699_v14  ;;  %v1720_v18 = vadd.f32 %v1324_v15, %v1645_v50  ;;  %1354 = vmatpush3.msra.mxu1 %v193_v20 }
 0x144   :  { %v355_v17 = vpop.f32.mrf.mxu0  ;;  %1355 = vmatprep.subr.mxu1 %v192_v26 }
 0x145   :  { %406 = vmax.xlane.f32.xlu1 %v1696_v13  ;;  %v1723_v19 = vadd.f32 %v1645_v50, %v355_v17  ;;  %1356 = vmatpush3.msra.mxu1 %v192_v26 }
 0x147   :  { %408 = vmax.xlane.f32.xlu0 %v1723_v19 }
 0x149   :  { %410 = vmax.xlane.f32.xlu1 %v1720_v18 }
 0x1b4   :  { %v381_v27 = vpop.xlane.xlu0 %380 }
 0x1b5   :  { %v1732_v30 = vmax.f32 %v1727_v25, %v381_v27 }
 0x1b6   :  { %v387_v31 = vpop.xlane.xlu1 %386 }
 0x1b7   :  { %v428_v34 = vsub.f32 %v1727_v25, %v1732_v30  ;;  %990 = vst.msk [vmem:[#allocation3] sm:$0xff] %vm111_vm0, %v1732_v30  ;;  %v1741_v35 = vmax.f32 %v1729_v28, %v387_v31  ;;  %478 = vperm.xlu0 %1390, %v1732_v30   ;;  %v1820_v31 = vld [vmem:[#allocation3 + $0x58] sm:$0xff] }
 0x1b8   :  { %v383_v36 = vpop.xlane.xlu0 %382 }
 0x1b9   :  { %993 = vst.msk [vmem:[#allocation3 + $0x18] sm:$0xff] %vm111_vm0, %v1741_v35  ;;  %v1751_v40 = vmax.f32 %v1734_v32, %v383_v36 }
 0x1ba   :  { %v385_v41 = vpop.xlane.xlu1 %384 }
 0x1bb   :  { %v429_v44 = vsub.f32 %v1734_v32, %v1751_v40  ;;  %991 = vst.msk [vmem:[#allocation3 + $0x8] sm:$0xff] %vm111_vm0, %v1751_v40  ;;  %v1760_v45 = vmax.f32 %v1744_v37, %v385_v41  ;;  %483 = vperm.xlu1 %1391, %v1751_v40  }
 0x1bc   :  { %v389_v47 = vpop.xlane.xlu0 %388 }
 0x1bd   :  { %v430_v49 = vsub.f32 %v1744_v37, %v1760_v45  ;;  %992 = vst.msk [vmem:[#allocation3 + $0x10] sm:$0xff] %vm111_vm0, %v1760_v45  ;;  %v1770_v50 = vmax.f32 %v1753_v42, %v389_v47 }
 0x1be   :  { %v391_v51 = vpop.xlane.xlu1 %390 }
 0x1bf   :  { %v1775_v58 = vmax.f32 %v1763_v46, %v391_v51  ;;  %493 = vperm.xlu1 %1391, %v1741_v35   ;;  %994 = vst.msk [vmem:[#allocation3 + $0x20] sm:$0xff] %vm111_vm0, %v1770_v50  ;;  %v1840_v51 = vld [vmem:[#allocation3 + $0x68] sm:$0xff]  ;;  %v2033_v32 = vsub.f32 %v1753_v42, %v1770_v50 }
 0x1c0   :  { %v393_v63 = vpop.xlane.xlu0 %392 }
 0x1c1   :  { %995 = vst.msk [vmem:[#allocation3 + $0x28] sm:$0xff] %vm111_vm0, %v1775_v58  ;;  %v1789_v4 = vmax.f32 %v1772_v53, %v393_v63  ;;  %v452_v40 = vmul.f32 1.442695, %v2033_v32  ;;  %v2036_v25 = vsub.f32 %v1763_v46, %v1775_v58 }
 0x1c2   :  { %v395_v7 = vpop.xlane.xlu1 %394 }
 0x1c3   :  { %v1794_v12 = vmax.f32 %v1782_v62, %v395_v7  ;;  %488 = vperm.xlu1 %1391, %v1760_v45   ;;  %996 = vst.msk [vmem:[#allocation3 + $0x30] sm:$0xff] %vm111_vm0, %v1789_v4  ;;  %v2035_v37 = vsub.f32 %v1772_v53, %v1789_v4  ;;  %v454_v30 = vmul.f32 1.442695, %v2036_v25 }
 0x1c4   :  { %v397_v17 = vpop.xlane.xlu0 %396 }
 0x1c5   :  { %997 = vst.msk [vmem:[#allocation3 + $0x38] sm:$0xff] %vm111_vm0, %v1794_v12  ;;  %v1808_v22 = vmax.f32 %v1791_v8, %v397_v17  ;;  %v456_v45 = vmul.f32 1.442695, %v2035_v37  ;;  %v611_v37 = vld [vmem:[#allocation4 + $0x38] sm:$0xff] }
 0x1c6   :  { %v399_v23 = vpop.xlane.xlu1 %398 }
 0x1c7   :  { %v1813_v27 = vmax.f32 %v1801_v16, %v399_v23  ;;  %503 = vperm.xlu1 %1391, %v1775_v58   ;;  %998 = vst.msk [vmem:[#allocation3 + $0x40] sm:$0xff] %vm111_vm0, %v1808_v22  ;;  %v1860_v23 = vld [vmem:[#allocation3 + $0x78] sm:$0xff] }
 0x1c8   :  { %v401_v33 = vpop.xlane.xlu0 %400 }
 0x1c9   :  { %999 = vst.msk [vmem:[#allocation3 + $0x48] sm:$0xff] %vm111_vm0, %v1813_v27  ;;  %523 = vperm.xlu0 %1390, %v1813_v27   ;;  %v1828_v38 = vmax.f32 %v1810_v24, %v401_v33  ;;  %v2040_v46 = vsub.f32 %v1801_v16, %v1813_v27 }
 0x1ca   :  { %v403_v41 = vpop.xlane.xlu1 %402 }
 0x1cb   :  { %v1833_v47 = vmax.f32 %v1820_v31, %v403_v41  ;;  %498 = vperm.xlu1 %1391, %v1770_v50   ;;  %1000 = vst.msk [vmem:[#allocation3 + $0x50] sm:$0xff] %vm111_vm0, %v1828_v38  ;;  %v2039_v50 = vsub.f32 %v1810_v24, %v1828_v38  ;;  %v462_v58 = vmul.f32 1.442695, %v2040_v46 }
 0x1cc   :  { %v405_v55 = vpop.xlane.xlu0 %404 }
 0x1cd   :  { %1001 = vst.msk [vmem:[#allocation3 + $0x58] sm:$0xff] %vm111_vm0, %v1833_v47  ;;  %533 = vperm.xlu0 %1390, %v1833_v47   ;;  %v1848_v2 = vmax.f32 %v1830_v43, %v405_v55  ;;  %v464_v53 = vmul.f32 1.442695, %v2039_v50 }
 0x1ce   :  { %v407_v7 = vpop.xlane.xlu1 %406 }
 0x1cf   :  { %v1853_v17 = vmax.f32 %v1840_v51, %v407_v7  ;;  %513 = vperm.xlu1 %1391, %v1794_v12   ;;  %1002 = vst.msk [vmem:[#allocation3 + $0x60] sm:$0xff] %vm111_vm0, %v1848_v2 }
 0x1d0   :  { %v409_v26 = vpop.xlane.xlu0 %408 }
 0x1d1   :  { %1003 = vst.msk [vmem:[#allocation3 + $0x68] sm:$0xff] %vm111_vm0, %v1853_v17  ;;  %543 = vperm.xlu0 %1390, %v1853_v17   ;;  %v1868_v41 = vmax.f32 %v1850_v11, %v409_v26 }
 0x1d2   :  { %v411_v55 = vpop.xlane.xlu1 %410 }
 0x1d3   :  { %v1871_v7 = vmax.f32 %v1860_v23, %v411_v55  ;;  %508 = vperm.xlu1 %1391, %v1789_v4   ;;  %1004 = vst.msk [vmem:[#allocation3 + $0x70] sm:$0xff] %vm111_vm0, %v1868_v41  ;;  %v2043_v16 = vsub.f32 %v1850_v11, %v1868_v41 }
 0x1d5   :  { %1005 = vst.msk [vmem:[#allocation3 + $0x78] sm:$0xff] %vm111_vm0, %v1871_v7  ;;  %553 = vperm.xlu0 %1390, %v1871_v7   ;;  %v472_v27 = vmul.f32 1.442695, %v2043_v16  ;;  %v2045_v11 = vsub.f32 %v1860_v23, %v1871_v7 }
 0x1d7   :  { %518 = vperm.xlu1 %1391, %v1808_v22  }
 0x1db   :  { %528 = vperm.xlu1 %1391, %v1828_v38  }
 0x1df   :  { %538 = vperm.xlu1 %1391, %v1848_v2  }
 0x1e3   :  { %548 = vperm.xlu1 %1391, %v1868_v41   ;;  %v474_v41 = vmul.f32 1.442695, %v2045_v11 }
 0x232   :  { %v479_v26 = vpop.permute.xlu0 %478 }
 0x233   :  { %v556_v55 = vsub.f32 %v1648_v52, %v479_v26 }
 0x235   :  { %v572_v63 = vmul.f32 1.442695, %v556_v55 }
 0x236   :  { %v484_v20 = vpop.permute.xlu1 %483 }
 0x237   :  { %1392 = vpow2.f32 %v572_v63  ;;  %v557_v33 = vsub.f32 %v1655_v56, %v484_v20 }
 0x239   :  { %v574_v36 = vmul.f32 1.442695, %v557_v33 }
 0x23a   :  { %v494_v48 = vpop.permute.xlu1 %493 }
 0x23b   :  { %1394 = vpow2.f32 %v574_v36  ;;  %v559_v21 = vsub.f32 %v1651_v54, %v494_v48 }
 0x23d   :  { %v578_v29 = vmul.f32 1.442695, %v559_v21 }
 0x23e   :  { %v489_v3 = vpop.permute.xlu1 %488 }
 0x23f   :  { %1396 = vpow2.f32 %v578_v29  ;;  %v558_v15 = vsub.f32 %v1659_v57, %v489_v3 }
 0x241   :  { %v576_v39 = vmul.f32 1.442695, %v558_v15 }
 0x242   :  { %v504_v59 = vpop.permute.xlu1 %503 }
 0x243   :  { %1398 = vpow2.f32 %v576_v39  ;;  %v561_v52 = vsub.f32 %v1664_v60, %v504_v59 }
 0x244   :  { %v1393_v26 = vpop.eup %1392  ;;  %v524_v55 = vpop.permute.xlu0 %523 }
 0x245   :  { %v582_v63 = vmul.f32 1.442695, %v561_v52  ;;  %636 = vadd.xlane.f32.xlu1 %v1393_v26  ;;  %1357 = vmatprep.mubr.f32.mxu1 %v1393_v26  ;;  %v565_v60 = vsub.f32 %v1680_v5, %v524_v55 }
 0x246   :  { %v499_v56 = vpop.permute.xlu1 %498 }
 0x247   :  { %1400 = vpow2.f32 %v582_v63  ;;  %v560_v36 = vsub.f32 %v1667_v61, %v499_v56  ;;  %v590_v33 = vmul.f32 1.442695, %v565_v60 }
 0x248   :  { %v1395_v54 = vpop.eup %1394  ;;  %v534_v48 = vpop.permute.xlu0 %533 }
 0x249   :  { %v580_v21 = vmul.f32 1.442695, %v560_v36  ;;  %638 = vadd.xlane.f32.xlu0 %v1395_v54  ;;  %1358 = vmatmul.mubr.f32.vlgmr.msra.gmra.mxu1 %v1395_v54  ;;  %v567_v52 = vsub.f32 %v1688_v9, %v534_v48 }
 0x24a   :  { %v514_v57 = vpop.permute.xlu1 %513 }
 0x24b   :  { %1402 = vpow2.f32 %v580_v21  ;;  %v563_v39 = vsub.f32 %v1672_v0, %v514_v57  ;;  %v594_v55 = vmul.f32 1.442695, %v567_v52 }
 0x24c   :  { %v1397_v3 = vpop.eup %1396  ;;  %v544_v29 = vpop.permute.xlu0 %543 }
 0x24d   :  { %v586_v59 = vmul.f32 1.442695, %v563_v39  ;;  %642 = vadd.xlane.f32.xlu1 %v1397_v3  ;;  %v569_v56 = vsub.f32 %v1696_v13, %v544_v29 }
 0x24e   :  { %v509_v15 = vpop.permute.xlu1 %508 }
 0x24f   :  { %1404 = vpow2.f32 %v586_v59  ;;  %v562_v20 = vsub.f32 %v1675_v1, %v509_v15  ;;  %v598_v48 = vmul.f32 1.442695, %v569_v56 }
 0x250   :  { %v1399_v61 = vpop.eup %1398  ;;  %v554_v36 = vpop.permute.xlu0 %553 }
 0x251   :  { %v584_v26 = vmul.f32 1.442695, %v562_v20  ;;  %640 = vadd.xlane.f32.xlu0 %v1399_v61  ;;  %1360 = vmatprep.mubr.f32.mxu1 %v1399_v61  ;;  %v571_v57 = vsub.f32 %v1720_v18, %v554_v36 }
 0x252   :  { %v519_v63 = vpop.permute.xlu1 %518  ;;  %1361 = vmatmul.mubr.f32.gmra.mxu1 %v1397_v3 }
 0x253   :  { %1406 = vpow2.f32 %v584_v26  ;;  %v564_v0 = vsub.f32 %v1683_v6, %v519_v63  ;;  %v602_v60 = vmul.f32 1.442695, %v571_v57  ;;  %v446_v63 = vmul.f32 1.442695, %v429_v44  ;;  %v604_v57 = vld [vmem:[#allocation4] sm:$0xff] }
 0x254   :  { %v1401_v5 = vpop.eup %1400  ;;  %1408 = vpow2.f32 %v590_v33  ;;  %v2034_v44 = vsub.f32 %v1729_v28, %v1741_v35  ;;  %v2038_v28 = vsub.f32 %v1782_v62, %v1794_v12  ;;  %v2042_v12 = vsub.f32 %v1820_v31, %v1833_v47 }
 0x255   :  { %v588_v54 = vmul.f32 1.442695, %v564_v0  ;;  %646 = vadd.xlane.f32.xlu1 %v1401_v5 }
 0x256   :  { %v529_v1 = vpop.permute.xlu1 %528  ;;  %v450_v56 = vmul.f32 1.442695, %v2034_v44  ;;  %v458_v35 = vmul.f32 1.442695, %v2038_v28  ;;  %v466_v24 = vmul.f32 1.442695, %v2042_v12 }
 0x257   :  { %1410 = vpow2.f32 %v588_v54  ;;  %v566_v9 = vsub.f32 %v1691_v10, %v529_v1 }
 0x258   :  { %v1403_v21 = vpop.eup %1402  ;;  %1412 = vpow2.f32 %v594_v55  ;;  %v444_v55 = vmul.f32 1.442695, %v428_v34  ;;  %v2037_v34 = vsub.f32 %v1791_v8, %v1808_v22  ;;  %v2041_v22 = vsub.f32 %v1830_v43, %v1848_v2 }
 0x259   :  { %v592_v39 = vmul.f32 1.442695, %v566_v9  ;;  %644 = vadd.xlane.f32.xlu0 %v1403_v21  ;;  %1363 = vmatprep.mubr.f32.mxu1 %v1403_v21  ;;  %v2044_v2 = vsub.f32 %v1840_v51, %v1853_v17 }
 0x25a   :  { %v539_v6 = vpop.permute.xlu1 %538  ;;  %1364 = vmatmul.mubr.f32.gmra.mxu1 %v1401_v5  ;;  %v448_v5 = vmul.f32 1.442695, %v430_v49  ;;  %v460_v42 = vmul.f32 1.442695, %v2037_v34  ;;  %v468_v36 = vmul.f32 1.442695, %v2041_v22 }
 0x25b   :  { %1414 = vpow2.f32 %v592_v39  ;;  %v568_v13 = vsub.f32 %v1699_v14, %v539_v6  ;;  %v470_v1 = vmul.f32 1.442695, %v2044_v2 }
 0x25c   :  { %v1405_v3 = vpop.eup %1404  ;;  %1416 = vpow2.f32 %v598_v48 }
 0x25d   :  { %v596_v59 = vmul.f32 1.442695, %v568_v13  ;;  %650 = vadd.xlane.f32.xlu1 %v1405_v3  ;;  %v605_v13 = vld [vmem:[#allocation4 + $0x8] sm:$0xff] }
 0x25e   :  { %v549_v15 = vpop.permute.xlu1 %548 }
 0x25f   :  { %1418 = vpow2.f32 %v596_v59  ;;  %v570_v10 = vsub.f32 %v1723_v19, %v549_v15  ;;  %v607_v15 = vld [vmem:[#allocation4 + $0x18] sm:$0xff] }
 0x260   :  { %v1407_v29 = vpop.eup %1406  ;;  %1420 = vpow2.f32 %v602_v60 }
 0x261   :  { %v1409_v18 = vpop.eup %1408  ;;  %v600_v20 = vmul.f32 1.442695, %v570_v10  ;;  %648 = vadd.xlane.f32.xlu0 %v1407_v29  ;;  %1366 = vmatprep.mubr.f32.mxu1 %v1407_v29 }
 0x262   :  { %654 = vadd.xlane.f32.xlu1 %v1409_v18  ;;  %1367 = vmatmul.mubr.f32.gmra.mxu1 %v1405_v3 }
 0x263   :  { %1422 = vpow2.f32 %v600_v20  ;;  %v606_v20 = vld [vmem:[#allocation4 + $0x10] sm:$0xff] }
 0x264   :  { %v1411_v61 = vpop.eup %1410  ;;  %1424 = vpow2.f32 %v446_v63 }
 0x265   :  { %v1413_v14 = vpop.eup %1412  ;;  %652 = vadd.xlane.f32.xlu0 %v1411_v61  ;;  %1369 = vmatprep.mubr.f32.mxu1 %v1411_v61  ;;  %1426 = vpow2.f32 %v448_v5 }
 0x266   :  { %658 = vadd.xlane.f32.xlu1 %v1413_v14  ;;  %1370 = vmatmul.mubr.f32.gmra.mxu1 %v1409_v18  ;;  %1428 = vpow2.f32 %v444_v55  ;;  %v608_v55 = vld [vmem:[#allocation4 + $0x20] sm:$0xff] }
 0x267   :  { %1430 = vpow2.f32 %v452_v40 }
 0x268   :  { %v1415_v33 = vpop.eup %1414  ;;  %1432 = vpow2.f32 %v450_v56 }
 0x269   :  { %v1417_v52 = vpop.eup %1416  ;;  %656 = vadd.xlane.f32.xlu0 %v1415_v33  ;;  %1372 = vmatprep.mubr.f32.mxu1 %v1415_v33  ;;  %1434 = vpow2.f32 %v456_v45 }
 0x26a   :  { %662 = vadd.xlane.f32.xlu1 %v1417_v52  ;;  %1373 = vmatmul.mubr.f32.gmra.mxu1 %v1413_v14  ;;  %1436 = vpow2.f32 %v454_v30 }
 0x26b   :  { %1438 = vpow2.f32 %v460_v42 }
 0x26c   :  { %v1419_v19 = vpop.eup %1418  ;;  %1440 = vpow2.f32 %v458_v35  ;;  %v613_v35 = vld [vmem:[#allocation4 + $0x48] sm:$0xff] }
 0x26d   :  { %v1421_v26 = vpop.eup %1420  ;;  %660 = vadd.xlane.f32.xlu0 %v1419_v19  ;;  %1375 = vmatprep.mubr.f32.mxu1 %v1419_v19  ;;  %1442 = vpow2.f32 %v464_v53  ;;  %v609_v19 = vld [vmem:[#allocation4 + $0x28] sm:$0xff] }
 0x26e   :  { %666 = vadd.xlane.f32.xlu1 %v1421_v26  ;;  %1376 = vmatmul.mubr.f32.gmra.mxu1 %v1417_v52  ;;  %1444 = vpow2.f32 %v462_v58 }
 0x26f   :  { %1446 = vpow2.f32 %v468_v36 }
 0x270   :  { %v1423_v0 = vpop.eup %1422  ;;  %1448 = vpow2.f32 %v466_v24 }
 0x271   :  { %664 = vadd.xlane.f32.xlu0 %v1423_v0  ;;  %1378 = vmatprep.mubr.f32.mxu1 %v1423_v0  ;;  %v1425_v49 = vpop.eup %1424  ;;  %1450 = vpow2.f32 %v472_v27 }
 0x272   :  { %1379 = vmatmul.mubr.f32.gmra.mxu1 %v1421_v26  ;;  %v1427_v4 = vpop.eup %1426  ;;  %1452 = vpow2.f32 %v470_v1  ;;  %v621_v60 = vmul.f32 %v1425_v49, %v605_v13 }
 0x273   :  { %v1429_v8 = vpop.eup %1428  ;;  %1454 = vpow2.f32 %v474_v41  ;;  %v622_v33 = vmul.f32 %v1427_v4, %v606_v20 }
 0x274   :  { %v1939_v62 = vpop.eup %1430  ;;  %v620_v39 = vmul.f32 %v1429_v8, %v604_v57 }
 0x275   :  { %v1433_v38 = vpop.eup %1432  ;;  %v624_v44 = vmul.f32 %v1939_v62, %v608_v55 }
 0x276   :  { %v1948_v54 = vpop.eup %1434  ;;  %v623_v29 = vmul.f32 %v1433_v38, %v607_v15 }
 0x277   :  { %v1437_v43 = vpop.eup %1436 }
 0x278   :  { %v1954_v31 = vpop.eup %1438  ;;  %v625_v0 = vmul.f32 %v1437_v43, %v609_v19 }
 0x279   :  { %v1441_v47 = vpop.eup %1440 }
 0x27a   :  { %v1960_v9 = vpop.eup %1442  ;;  %v627_v30 = vmul.f32 %v1441_v47, %v611_v37 }
 0x27b   :  { %v1963_v21 = vpop.eup %1444 }
 0x27c   :  { %v1965_v51 = vpop.eup %1446  ;;  %v629_v46 = vmul.f32 %v1963_v21, %v613_v35 }
 0x27d   :  { %v1969_v17 = vpop.eup %1448 }
 0x27e   :  { %v1971_v48 = vpop.eup %1450 }
 0x27f   :  { %724 = vperm.xlu1 %1391, %v1425_v49   ;;  %v1975_v23 = vpop.eup %1452  ;;  %v610_v49 = vld [vmem:[#allocation4 + $0x30] sm:$0xff] }
 0x280   :  { %v1978_v7 = vpop.eup %1454  ;;  %v626_v53 = vmul.f32 %v1948_v54, %v610_v49 }
 0x283   :  { %729 = vperm.xlu1 %1391, %v1427_v4  }
 0x287   :  { %739 = vperm.xlu1 %1391, %v1939_v62   ;;  %719 = vperm.xlu0 %1390, %v1429_v8   ;;  %v612_v8 = vld [vmem:[#allocation4 + $0x40] sm:$0xff]  ;;  %v615_v62 = vld [vmem:[#allocation4 + $0x58] sm:$0xff] }
 0x288   :  { %v631_v27 = vmul.f32 %v1969_v17, %v615_v62 }
 0x28b   :  { %749 = vperm.xlu1 %1391, %v1948_v54   ;;  %734 = vperm.xlu0 %1390, %v1433_v38   ;;  %v628_v38 = vmul.f32 %v1954_v31, %v612_v8 }
 0x28f   :  { %759 = vperm.xlu1 %1391, %v1954_v31   ;;  %744 = vperm.xlu0 %1390, %v1437_v43   ;;  %v614_v43 = vld [vmem:[#allocation4 + $0x50] sm:$0xff] }
 0x293   :  { %769 = vperm.xlu1 %1391, %v1960_v9   ;;  %754 = vperm.xlu0 %1390, %v1441_v47   ;;  %v617_v47 = vld [vmem:[#allocation4 + $0x68] sm:$0xff] }
 0x294   :  { %v633_v57 = vmul.f32 %v1975_v23, %v617_v47 }
 0x297   :  { %779 = vperm.xlu1 %1391, %v1965_v51   ;;  %764 = vperm.xlu0 %1390, %v1963_v21   ;;  %v630_v21 = vmul.f32 %v1960_v9, %v614_v43 }
 0x29b   :  { %789 = vperm.xlu1 %1391, %v1971_v48   ;;  %774 = vperm.xlu0 %1390, %v1969_v17   ;;  %v616_v17 = vld [vmem:[#allocation4 + $0x60] sm:$0xff] }
 0x29c   :  { %v632_v15 = vmul.f32 %v1965_v51, %v616_v17 }
 0x29f   :  { %784 = vperm.xlu0 %1390, %v1975_v23  }
 0x2a3   :  { %794 = vperm.xlu0 %1390, %v1978_v7  }
 0x2ce   :  { %v637_v6 = vpop.xlane.xlu1 %636 }
 0x2cf   :  { %v668_v3 = vadd.f32 %v637_v6, %v620_v39 }
 0x2d1   :  { %685 = vst.msk [vmem:[#allocation4] sm:$0xff] %vm111_vm0, %v668_v3  ;;  %v619_v3 = vld [vmem:[#allocation4 + $0x78] sm:$0xff] }
 0x2d2   :  { %v639_v59 = vpop.xlane.xlu0 %638 }
 0x2d3   :  { %v669_v10 = vadd.f32 %v639_v59, %v621_v60 }
 0x2d5   :  { %686 = vst.msk [vmem:[#allocation4 + $0x8] sm:$0xff] %vm111_vm0, %v669_v10 }
 0x2d6   :  { %v643_v18 = vpop.xlane.xlu1 %642 }
 0x2d7   :  { %v671_v61 = vadd.f32 %v643_v18, %v623_v29  ;;  %v635_v29 = vmul.f32 %v1978_v7, %v619_v3  ;;  %v618_v18 = vld [vmem:[#allocation4 + $0x70] sm:$0xff] }
 0x2d8   :  { %v1009_v14 = vld [vmem:[#allocation4] sm:$0xff] }
 0x2d9   :  { %688 = vst.msk [vmem:[#allocation4 + $0x18] sm:$0xff] %vm111_vm0, %v671_v61  ;;  %1456 = vrcp.f32 %v1009_v14 }
 0x2da   :  { %v641_v52 = vpop.xlane.xlu0 %640 }
 0x2db   :  { %v670_v26 = vadd.f32 %v641_v52, %v622_v33  ;;  %v634_v52 = vmul.f32 %v1971_v48, %v618_v18 }
 0x2dc   :  { %v1010_v63 = vld [vmem:[#allocation4 + $0x8] sm:$0xff] }
 0x2dd   :  { %687 = vst.msk [vmem:[#allocation4 + $0x10] sm:$0xff] %vm111_vm0, %v670_v26  ;;  %1458 = vrcp.f32 %v1010_v63 }
 0x2de   :  { %v647_v5 = vpop.xlane.xlu1 %646 }
 0x2df   :  { %v673_v32 = vadd.f32 %v647_v5, %v625_v0 }
 0x2e0   :  { %v1012_v40 = vld [vmem:[#allocation4 + $0x18] sm:$0xff] }
 0x2e1   :  { %690 = vst.msk [vmem:[#allocation4 + $0x28] sm:$0xff] %vm111_vm0, %v673_v32  ;;  %1460 = vrcp.f32 %v1012_v40 }
 0x2e2   :  { %v645_v56 = vpop.xlane.xlu0 %644 }
 0x2e3   :  { %v672_v45 = vadd.f32 %v645_v56, %v624_v44 }
 0x2e4   :  { %v1011_v25 = vld [vmem:[#allocation4 + $0x10] sm:$0xff] }
 0x2e5   :  { %689 = vst.msk [vmem:[#allocation4 + $0x20] sm:$0xff] %vm111_vm0, %v672_v45  ;;  %1462 = vrcp.f32 %v1011_v25 }
 0x2e6   :  { %v1457_v34 = vpop.eup %1456  ;;  %v651_v42 = vpop.xlane.xlu1 %650 }
 0x2e7   :  { %v675_v28 = vadd.f32 %v651_v42, %v627_v30  ;;  %1075 = vperm.xlu1 %1391, %v1457_v34  }
 0x2e8   :  { %v1014_v50 = vld [vmem:[#allocation4 + $0x28] sm:$0xff] }
 0x2e9   :  { %692 = vst.msk [vmem:[#allocation4 + $0x38] sm:$0xff] %vm111_vm0, %v675_v28  ;;  %1464 = vrcp.f32 %v1014_v50 }
 0x2ea   :  { %v1459_v4 = vpop.eup %1458  ;;  %v649_v58 = vpop.xlane.xlu0 %648 }
 0x2eb   :  { %v655_v22 = vpop.xlane.xlu1 %654  ;;  %v674_v36 = vadd.f32 %v649_v58, %v626_v53  ;;  %1080 = vperm.xlu0 %1390, %v1459_v4  }
 0x2ec   :  { %v677_v12 = vadd.f32 %v655_v22, %v629_v46  ;;  %v1013_v24 = vld [vmem:[#allocation4 + $0x20] sm:$0xff] }
 0x2ed   :  { %691 = vst.msk [vmem:[#allocation4 + $0x30] sm:$0xff] %vm111_vm0, %v674_v36  ;;  %1466 = vrcp.f32 %v1013_v24 }
 0x2ee   :  { %v1461_v16 = vpop.eup %1460  ;;  %694 = vst.msk [vmem:[#allocation4 + $0x48] sm:$0xff] %vm111_vm0, %v677_v12  ;;  %v653_v54 = vpop.xlane.xlu0 %652 }
 0x2ef   :  { %v659_v2 = vpop.xlane.xlu1 %658  ;;  %v676_v1 = vadd.f32 %v653_v54, %v628_v38  ;;  %1090 = vperm.xlu0 %1390, %v1461_v16  }
 0x2f0   :  { %v679_v11 = vadd.f32 %v659_v2, %v631_v27  ;;  %v1016_v41 = vld [vmem:[#allocation4 + $0x38] sm:$0xff] }
 0x2f1   :  { %693 = vst.msk [vmem:[#allocation4 + $0x40] sm:$0xff] %vm111_vm0, %v676_v1  ;;  %1468 = vrcp.f32 %v1016_v41 }
 0x2f2   :  { %v1463_v31 = vpop.eup %1462  ;;  %696 = vst.msk [vmem:[#allocation4 + $0x58] sm:$0xff] %vm111_vm0, %v679_v11  ;;  %v657_v39 = vpop.xlane.xlu0 %656 }
 0x2f3   :  { %v663_v6 = vpop.xlane.xlu1 %662  ;;  %v678_v13 = vadd.f32 %v657_v39, %v630_v21  ;;  %1085 = vperm.xlu1 %1391, %v1463_v31  }
 0x2f4   :  { %v681_v60 = vadd.f32 %v663_v6, %v633_v57  ;;  %v1015_v59 = vld [vmem:[#allocation4 + $0x30] sm:$0xff] }
 0x2f5   :  { %695 = vst.msk [vmem:[#allocation4 + $0x50] sm:$0xff] %vm111_vm0, %v678_v13  ;;  %v1018_v10 = vld [vmem:[#allocation4 + $0x48] sm:$0xff]  ;;  %1470 = vrcp.f32 %v1015_v59 }
 0x2f6   :  { %v1465_v9 = vpop.eup %1464  ;;  %698 = vst.msk [vmem:[#allocation4 + $0x68] sm:$0xff] %vm111_vm0, %v681_v60  ;;  %v661_v23 = vpop.xlane.xlu0 %660  ;;  %1472 = vrcp.f32 %v1018_v10 }
 0x2f7   :  { %v667_v20 = vpop.xlane.xlu1 %666  ;;  %v680_v61 = vadd.f32 %v661_v23, %v632_v15  ;;  %1100 = vperm.xlu0 %1390, %v1465_v9  }
 0x2f8   :  { %v683_v14 = vadd.f32 %v667_v20, %v635_v29  ;;  %v1017_v33 = vld [vmem:[#allocation4 + $0x40] sm:$0xff] }
 0x2f9   :  { %697 = vst.msk [vmem:[#allocation4 + $0x60] sm:$0xff] %vm111_vm0, %v680_v61  ;;  %v1020_v51 = vld [vmem:[#allocation4 + $0x58] sm:$0xff]  ;;  %1474 = vrcp.f32 %v1017_v33 }
 0x2fa   :  { %v1467_v19 = vpop.eup %1466  ;;  %700 = vst.msk [vmem:[#allocation4 + $0x78] sm:$0xff] %vm111_vm0, %v683_v14  ;;  %v665_v26 = vpop.xlane.xlu0 %664  ;;  %1476 = vrcp.f32 %v1020_v51 }
 0x2fb   :  { %v682_v7 = vadd.f32 %v665_v26, %v634_v52  ;;  %1095 = vperm.xlu1 %1391, %v1467_v19   ;;  %v725_v49 = vpop.permute.xlu1 %724 }
 0x2fc   :  { %v1019_v63 = vld [vmem:[#allocation4 + $0x50] sm:$0xff]  ;;  %v798_v21 = vmul.f32 0.0, %v725_v49 }
 0x2fd   :  { %699 = vst.msk [vmem:[#allocation4 + $0x70] sm:$0xff] %vm111_vm0, %v682_v7  ;;  %v1022_v0 = vld [vmem:[#allocation4 + $0x68] sm:$0xff]  ;;  %1478 = vrcp.f32 %v1019_v63 }
 0x2fe   :  { %v1469_v5 = vpop.eup %1468  ;;  %1480 = vrcp.f32 %v1022_v0 }
 0x2ff   :  { %1110 = vperm.xlu0 %1390, %v1469_v5   ;;  %v730_v35 = vpop.permute.xlu1 %729 }
 0x300   :  { %v1021_v55 = vld [vmem:[#allocation4 + $0x60] sm:$0xff]  ;;  %v799_v10 = vmul.f32 0.0, %v730_v35 }
 0x301   :  { %v1024_v32 = vld [vmem:[#allocation4 + $0x78] sm:$0xff]  ;;  %1482 = vrcp.f32 %v1021_v55 }
 0x302   :  { %v1471_v48 = vpop.eup %1470  ;;  %1484 = vrcp.f32 %v1024_v32  ;;  %v720_v28 = vpop.permute.xlu0 %719 }
 0x303   :  { %v1473_v40 = vpop.eup %1472  ;;  %1105 = vperm.xlu1 %1391, %v1471_v48   ;;  %v740_v53 = vpop.permute.xlu1 %739  ;;  %v797_v2 = vmul.f32 0.0, %v720_v28 }
 0x304   :  { %1120 = vperm.xlu0 %1390, %v1473_v40   ;;  %v1023_v44 = vld [vmem:[#allocation4 + $0x70] sm:$0xff]  ;;  %v801_v51 = vmul.f32 0.0, %v740_v53 }
 0x305   :  { %1486 = vrcp.f32 %v1023_v44 }
 0x306   :  { %v1475_v56 = vpop.eup %1474  ;;  %v735_v50 = vpop.permute.xlu0 %734 }
 0x307   :  { %v1477_v37 = vpop.eup %1476  ;;  %1115 = vperm.xlu1 %1391, %v1475_v56   ;;  %v750_v46 = vpop.permute.xlu1 %749  ;;  %v800_v13 = vmul.f32 0.0, %v735_v50 }
 0x308   :  { %1130 = vperm.xlu0 %1390, %v1477_v37   ;;  %v803_v40 = vmul.f32 0.0, %v750_v46 }
 0x309   :  { %v1359_v62 = vpop.f32.mrf.mxu1 }
 0x30a   :  { %v1479_v45 = vpop.eup %1478  ;;  %v745_v4 = vpop.permute.xlu0 %744  ;;  %v959_v39 = vadd.f32 %v1359_v62, %v798_v21 }
 0x30b   :  { %v1481_v25 = vpop.eup %1480  ;;  %1125 = vperm.xlu1 %1391, %v1479_v45   ;;  %v760_v8 = vpop.permute.xlu1 %759  ;;  %v802_v20 = vmul.f32 0.0, %v745_v4 }
 0x30c   :  { %1140 = vperm.xlu0 %1390, %v1481_v25   ;;  %v879_v24 = vpop.f32.mrf.mxu1 }
 0x30d   :  { %v958_v47 = vadd.f32 %v879_v24, %v797_v2 }
 0x30e   :  { %v1483_v30 = vpop.eup %1482  ;;  %v755_v58 = vpop.permute.xlu0 %754 }
 0x30f   :  { %v1485_v34 = vpop.eup %1484  ;;  %1135 = vperm.xlu1 %1391, %v1483_v30   ;;  %v2007_v36 = vpop.permute.xlu1 %769  ;;  %v804_v0 = vmul.f32 0.0, %v755_v58 }
 0x310   :  { %1150 = vperm.xlu0 %1390, %v1485_v34   ;;  %v805_v34 = vmul.f32 0.0, %v760_v8  ;;  %v807_v46 = vmul.f32 0.0, %v2007_v36 }
 0x312   :  { %v1487_v42 = vpop.eup %1486  ;;  %v765_v22 = vpop.permute.xlu0 %764 }
 0x313   :  { %1145 = vperm.xlu1 %1391, %v1487_v42   ;;  %v2009_v38 = vpop.permute.xlu1 %779  ;;  %v1362_v16 = vpop.f32.mrf.mxu1  ;;  %v806_v56 = vmul.f32 0.0, %v765_v22 }
 0x314   :  { %v961_v60 = vadd.f32 %v1362_v16, %v800_v13 }
 0x315   :  { %v889_v54 = vpop.f32.mrf.mxu1 }
 0x316   :  { %v775_v12 = vpop.permute.xlu0 %774  ;;  %v960_v29 = vadd.f32 %v889_v54, %v799_v10 }
 0x317   :  { %v2013_v43 = vpop.permute.xlu1 %789  ;;  %v808_v28 = vmul.f32 0.0, %v775_v12 }
 0x31a   :  { %v2011_v27 = vpop.permute.xlu0 %784  ;;  %v1365_v1 = vpop.f32.mrf.mxu1 }
 0x31b   :  { %v963_v14 = vadd.f32 %v1365_v1, %v802_v20  ;;  %v810_v24 = vmul.f32 0.0, %v2011_v27  ;;  %v809_v1 = vmul.f32 0.0, %v2009_v38 }
 0x31c   :  { %v899_v57 = vpop.f32.mrf.mxu1 }
 0x31d   :  { %v962_v26 = vadd.f32 %v899_v57, %v801_v51 }
 0x31e   :  { %v2015_v11 = vpop.permute.xlu0 %794 }
 0x31f   :  { %v812_v21 = vmul.f32 0.0, %v2015_v11 }
 0x322   :  { %v1368_v17 = vpop.f32.mrf.mxu1 }
 0x323   :  { %v965_v55 = vadd.f32 %v1368_v17, %v804_v0  ;;  %v811_v17 = vmul.f32 0.0, %v2013_v43 }
 0x324   :  { %v909_v59 = vpop.f32.mrf.mxu1 }
 0x325   :  { %v964_v37 = vadd.f32 %v909_v59, %v803_v40 }
 0x326   :  { %v1371_v23 = vpop.f32.mrf.mxu1 }
 0x327   :  { %v967_v45 = vadd.f32 %v1371_v23, %v806_v56 }
 0x328   :  { %v919_v33 = vpop.f32.mrf.mxu1 }
 0x329   :  { %v966_v50 = vadd.f32 %v919_v33, %v805_v34 }
 0x32a   :  { %v1374_v7 = vpop.f32.mrf.mxu1 }
 0x32b   :  { %v969_v53 = vadd.f32 %v1374_v7, %v808_v28 }
 0x32c   :  { %v929_v32 = vpop.f32.mrf.mxu1 }
 0x32d   :  { %v968_v54 = vadd.f32 %v929_v32, %v807_v46 }
 0x32e   :  { %v1377_v25 = vpop.f32.mrf.mxu1 }
 0x32f   :  { %v971_v8 = vadd.f32 %v1377_v25, %v810_v24 }
 0x330   :  { %v939_v4 = vpop.f32.mrf.mxu1 }
 0x331   :  { %v970_v57 = vadd.f32 %v939_v4, %v809_v1 }
 0x332   :  { %v1380_v2 = vpop.f32.mrf.mxu1 }
 0x333   :  { %v973_v36 = vadd.f32 %v1380_v2, %v812_v21 }
 0x362   :  { %v1076_v41 = vpop.permute.xlu1 %1075 }
 0x363   :  { %v1153_v31 = vmul.f32 %v1076_v41, %v958_v47 }
 0x365   :  { %1169 = vst [vmem:[#allocation12] sm:$0xff] %v1153_v31 }
 0x366   :  { %v1081_v6 = vpop.permute.xlu0 %1080 }
 0x367   :  { %v1154_v3 = vmul.f32 %v1081_v6, %v959_v39  ;;  %v949_v39 = vpop.f32.mrf.mxu1 }
 0x369   :  { %1170 = vst [vmem:[#allocation12 + $0x8] sm:$0xff] %v1154_v3 }
 0x36a   :  { %v1091_v15 = vpop.permute.xlu0 %1090 }
 0x36b   :  { %v1156_v9 = vmul.f32 %v1091_v15, %v961_v60  ;;  %v972_v60 = vadd.f32 %v949_v39, %v811_v17 }
 0x36d   :  { %1172 = vst [vmem:[#allocation12 + $0x18] sm:$0xff] %v1156_v9 }
 0x36e   :  { %v1086_v18 = vpop.permute.xlu1 %1085 }
 0x36f   :  { %v1155_v61 = vmul.f32 %v1086_v18, %v960_v29 }
 0x371   :  { %1171 = vst [vmem:[#allocation12 + $0x10] sm:$0xff] %v1155_v61 }
 0x372   :  { %v1101_v52 = vpop.permute.xlu0 %1100 }
 0x373   :  { %v1158_v19 = vmul.f32 %v1101_v52, %v963_v14 }
 0x375   :  { %1174 = vst [vmem:[#allocation12 + $0x28] sm:$0xff] %v1158_v19 }
 0x376   :  { %v1096_v63 = vpop.permute.xlu1 %1095 }
 0x377   :  { %v1157_v5 = vmul.f32 %v1096_v63, %v962_v26 }
 0x379   :  { %1173 = vst [vmem:[#allocation12 + $0x20] sm:$0xff] %v1157_v5 }
 0x37a   :  { %v1111_v48 = vpop.permute.xlu0 %1110 }
 0x37b   :  { %v1160_v44 = vmul.f32 %v1111_v48, %v965_v55 }
 0x37d   :  { %1176 = vst [vmem:[#allocation12 + $0x38] sm:$0xff] %v1160_v44 }
 0x37e   :  { %v1106_v30 = vpop.permute.xlu1 %1105 }
 0x37f   :  { %v1159_v42 = vmul.f32 %v1106_v30, %v964_v37  ;;  %v1121_v49 = vpop.permute.xlu0 %1120 }
 0x380   :  { %v1162_v35 = vmul.f32 %v1121_v49, %v967_v45 }
 0x381   :  { %1175 = vst [vmem:[#allocation12 + $0x30] sm:$0xff] %v1159_v42 }
 0x382   :  { %1178 = vst [vmem:[#allocation12 + $0x48] sm:$0xff] %v1162_v35  ;;  %v1116_v58 = vpop.permute.xlu1 %1115 }
 0x383   :  { %v1161_v62 = vmul.f32 %v1116_v58, %v966_v50  ;;  %v1131_v22 = vpop.permute.xlu0 %1130 }
 0x384   :  { %v1164_v16 = vmul.f32 %v1131_v22, %v969_v53 }
 0x385   :  { %1177 = vst [vmem:[#allocation12 + $0x40] sm:$0xff] %v1161_v62 }
 0x386   :  { %1180 = vst [vmem:[#allocation12 + $0x58] sm:$0xff] %v1164_v16  ;;  %v1126_v12 = vpop.permute.xlu1 %1125 }
 0x387   :  { %v1163_v47 = vmul.f32 %v1126_v12, %v968_v54  ;;  %v1141_v41 = vpop.permute.xlu0 %1140 }
 0x388   :  { %v1166_v31 = vmul.f32 %v1141_v41, %v971_v8 }
 0x389   :  { %1179 = vst [vmem:[#allocation12 + $0x50] sm:$0xff] %v1163_v47 }
 0x38a   :  { %1182 = vst [vmem:[#allocation12 + $0x68] sm:$0xff] %v1166_v31  ;;  %v1136_v27 = vpop.permute.xlu1 %1135 }
 0x38b   :  { %v1165_v6 = vmul.f32 %v1136_v27, %v970_v57  ;;  %v1151_v13 = vpop.permute.xlu0 %1150 }
 0x38c   :  { %v1168_v3 = vmul.f32 %v1151_v13, %v973_v36 }
 0x38d   :  { %1181 = vst [vmem:[#allocation12 + $0x60] sm:$0xff] %v1165_v6 }
 0x38e   :  { %1184 = vst [vmem:[#allocation12 + $0x78] sm:$0xff] %v1168_v3  ;;  %v1146_v38 = vpop.permute.xlu1 %1145 }
 0x38f   :  { %v1167_v59 = vmul.f32 %v1146_v38, %v972_v60 }
 0x391   :  { %1183 = vst [vmem:[#allocation12 + $0x70] sm:$0xff] %v1167_v59 }
 0x392   :  { %1559 = shalt.err (!%p1556_p5)
}
 0x393   :  { %1196 = dma.vmem_to_hbm [thread:$0]  %s1191_s5, 2048, %s2032_s4, [#allocation8], %s1576_s20, %s1576_s20, %s1577_s21  }
 0x394   :  { %1572 = dma.done.wait [#allocation8], 2048  }
 0x395   :  { %1573 = vsyncadd [#allocation8], 4294965248 }
 0x396   :  { %1200 = vsyncpa [#allocation7], 1 }
 0x397   :  { %1201 = vsyncpa [#allocation10], 1 }
 0x398   :  { %1202 = vsyncpa [#allocation8], 1 }

</bundles_post_ra>
